<compile_context>
chip_gen: v5e
topology: v5e:2x2
jax: 0.10.0
libtpu: 0.0.40
codegen_flags: <defaults>
</compile_context>

<pallas_src>
import math
from functools import partial

import jax
import jax.numpy as jnp
import numpy as np
from jax.experimental import pallas as pl
from jax.experimental.pallas import tpu as pltpu


def _mha_kernel(qkv_ref, mask_ref, wq_ref, bq_ref, wo_ref, bo_ref, o_ref, *,
                no_of_heads, d_k, batch_block, mxu_dtype, flatten_out):
    Bb = batch_block
    S = qkv_ref.shape[2]
    D = qkv_ref.shape[3]
    H = no_of_heads
    n = Bb * S

    def mxu(x):
        # Cast MXU operands only; accumulation / softmax / bias adds stay f32.
        return x if mxu_dtype is None else x.astype(mxu_dtype)

    wq = wq_ref[...]                              # (D, D), (in, out) layout
    bq = bq_ref[...].astype(jnp.float32)          # (1, D)
    wo = wo_ref[...]                              # (D, D), (in, out) layout
    bo = bo_ref[...].astype(jnp.float32)          # (1, D)

    # --- Fused Q/K/V projection ---------------------------------------------
    # Reference bug reproduced: q, k and v are ALL projected with _w_q, so the
    # three matmuls share one weight -> one tall matmul, weight stays resident.
    # (q, k, v were stacked in HBM by the wrapper; no in-kernel concatenate.)
    x_all = qkv_ref[...].reshape(3 * n, D)
    proj = jnp.dot(mxu(x_all), mxu(wq),
                   preferred_element_type=jnp.float32) + bq       # (3n, D) f32

    # Fold 1/sqrt(d_k) into Q (Q only ever feeds the score matmul).
    Q = (proj[0:n] * jnp.float32(1.0 / math.sqrt(d_k))).reshape(Bb, S, D)
    K = proj[n:2 * n].reshape(Bb, S, D)
    V = proj[2 * n:3 * n].reshape(Bb, S, D)

    # --- Attention (batched over the batch block) -----------------------------
    # H == 1 (the only config in which the reference w_o application shape-
    # checks), so the single head spans the full model dim -> no per-head loop.
    # For H > 1 this would become 'bhqd,bhkd->bhqk' / 'bhqk,bhkd->bhqd'.
    mask_zero = mask_ref[...].reshape(Bb, S, S) != 0   # int8: 1 == masked

    scores = jnp.einsum('bqd,bkd->bqk', mxu(Q), mxu(K),
                        preferred_element_type=jnp.float32)        # (Bb, S, S)
    scores = jnp.where(mask_zero, jnp.float32(-1e9), scores)

    # Softmax with the divide deferred: exp/sum in f32, then one approximate
    # EUP reciprocal applied to the (Bb, S, D) PV product instead of (S, S).
    m = jnp.max(scores, axis=-1, keepdims=True)
    p = jnp.exp(scores - m)                                        # (Bb, S, S)
    l = jnp.sum(p, axis=-1, keepdims=True)                         # (Bb, S, 1)
    pv = jnp.einsum('bqk,bkd->bqd', mxu(p), mxu(V),
                    preferred_element_type=jnp.float32)            # (Bb, S, D)
    attn = pv * pl.reciprocal(l, approx=True)

    # --- Output projection ----------------------------------------------------
    # _w_o applied to the per-head tensor exactly as in the reference (valid
    # because d_k == D).  One fused matmul for the whole block, ONE store.
    out = jnp.dot(mxu(attn.reshape(n, D)), mxu(wo),
                  preferred_element_type=jnp.float32) + bo         # (n, D) f32
    if flatten_out:
        # d_model not lane-aligned: store a (Bb, H, S*D) slab so the stored
        # minor dim is a multiple of 128 (avoids masked vst.msk partial stores).
        o_ref[...] = out.reshape(Bb, H, S * D).astype(o_ref.dtype)
    else:
        o_ref[...] = out.reshape(Bb, H, S, D).astype(o_ref.dtype)


def _vmem_limit_bytes():
    """~85% of this generation's physical per-core VMEM, capped at 100 MiB."""
    try:
        cap = getattr(pltpu.get_tpu_info(), "vmem_capacity_bytes", None)
        if cap:
            return int(min(cap * 0.85, 100 * 1024 * 1024))
    except Exception:
        pass
    return 48 * 1024 * 1024          # safe on every generation (v7x = 64 MiB)


def multi_head_attention_block(q, k, v, mask, params, *, no_of_heads,
                               batch_block=1, mxu_dtype=jnp.bfloat16):
    B, S, D = q.shape
    if D % no_of_heads != 0:
        raise ValueError(
            "Dimension is not divisible by number of heads. "
            "Will not be able to assign them equally to heads.")
    d_k = D // no_of_heads
    if d_k != D:
        # Reproducing the original module: w_o is applied to the un-merged
        # per-head tensor, which only shape-checks for a single head.
        raise ValueError("Reference forward only shape-checks with no_of_heads == 1.")
    if B % batch_block != 0:
        raise ValueError("batch must be divisible by batch_block")
    Bb = batch_block
    H = no_of_heads
    out_dtype = q.dtype

    # Stack q/k/v in HBM (free; the BlockSpec DMA pipelines it) so the kernel
    # sees one contiguous (3, Bb, S, D) block -> no in-kernel concatenate.
    qkv = jnp.stack([q, k, v], axis=0)                        # (3, B, S, D)

    # PyTorch Linear stores weight as (out, in); pre-transpose so the kernel
    # does a plain x @ W + b on the MXU.
    wq_t = jnp.asarray(params["wq"]).T                        # (D, D)
    wo_t = jnp.asarray(params["wo"]).T                        # (D, D)
    bq = jnp.asarray(params["bq"]).reshape(1, D).astype(jnp.float32)
    bo = jnp.asarray(params["bo"]).reshape(1, D).astype(jnp.float32)

    if mxu_dtype is not None:
        # bf16 HBM traffic + bf16 MXU operands; accumulation stays f32.
        qkv = qkv.astype(mxu_dtype)
        wq_t = wq_t.astype(mxu_dtype)
        wo_t = wo_t.astype(mxu_dtype)

    # Ship the mask as int8 (1 = masked position): 4x less DMA/VMEM than f32.
    mask_i8 = (jnp.asarray(mask) == 0).astype(jnp.int8)       # (B, 1, S, S)

    # Lane-dense output: if d_model is a multiple of 128 the natural layout
    # already stores full 128-lane rows; otherwise flatten (S, D) into the
    # minor dim inside the kernel and reshape back here.
    flatten_out = (D % 128) != 0
    if flatten_out:
        out_shape = jax.ShapeDtypeStruct((B, H, S * D), out_dtype)
        out_spec = pl.BlockSpec((Bb, H, S * D), lambda i: (i, 0, 0))
    else:
        out_shape = jax.ShapeDtypeStruct((B, H, S, D), out_dtype)
        out_spec = pl.BlockSpec((Bb, H, S, D), lambda i: (i, 0, 0, 0))

    kernel = partial(_mha_kernel, no_of_heads=H, d_k=d_k, batch_block=Bb,
                     mxu_dtype=mxu_dtype, flatten_out=flatten_out)

    out = pl.pallas_call(
        kernel,
        out_shape=out_shape,
        grid=(B // Bb,),
        in_specs=[
            pl.BlockSpec((3, Bb, S, D), lambda i: (0, i, 0, 0)),   # stacked qkv
            pl.BlockSpec((Bb, 1, S, S), lambda i: (i, 0, 0, 0)),   # int8 mask
            pl.BlockSpec((D, D), lambda i: (0, 0)),                # w_q^T
            pl.BlockSpec((1, D), lambda i: (0, 0)),                # b_q
            pl.BlockSpec((D, D), lambda i: (0, 0)),                # w_o^T
            pl.BlockSpec((1, D), lambda i: (0, 0)),                # b_o
        ],
        out_specs=out_spec,
        compiler_params=pltpu.CompilerParams(
            # Batch axis is embarrassingly parallel; with B//Bb >= 2 even
            # steps, both v7x TensorCores get balanced work.
            dimension_semantics=("parallel",),
            vmem_limit_bytes=_vmem_limit_bytes()),
    )(qkv, mask_i8, wq_t, bq, wo_t, bo)

    if flatten_out:
        out = out.reshape(B, H, S, D)
    return out


def _reference_jax(q, k, v, mask, params, no_of_heads):
    """Pure-JAX transcription of the PyTorch forward (for verification)."""
    D = q.shape[-1]
    d_k = D // no_of_heads

    def lin(x, w, b):
        return x @ w.T + b

    Q = lin(q, params["wq"], params["bq"])
    K = lin(k, params["wq"], params["bq"])   # bug reproduced: w_q used
    V = lin(v, params["wq"], params["bq"])   # bug reproduced: w_q used

    def heads(m):
        B, S, _ = m.shape
        return m.reshape(B, S, no_of_heads, d_k).transpose(0, 2, 1, 3)

    Qh, Kh, Vh = heads(Q), heads(K), heads(V)
    scores = Qh @ jnp.swapaxes(Kh, -2, -1) / math.sqrt(d_k)
    scores = jnp.where(mask == 0, -1e9, scores)
    probs = jax.nn.softmax(scores, axis=-1)
    x = probs @ Vh                            # (B, H, S, d_k)
    return x @ params["wo"].T + params["bo"]  # bugged w_o application


if __name__ == "__main__":
    # H=1 is the only config in which the reference module's w_o(x) shape-
    # checks; d_model=128 keeps every matmul dim and the output store
    # 128-lane aligned (the v5e alignment recommendation).
    B, S, d_model, H = 2, 8, 128, 1
    key = jax.random.PRNGKey(0)
    kq, kk, kv, kwq, kbq, kwo, kbo = jax.random.split(key, 7)

    q = jax.random.normal(kq, (B, S, d_model), jnp.float32)
    k = jax.random.normal(kk, (B, S, d_model), jnp.float32)
    v = jax.random.normal(kv, (B, S, d_model), jnp.float32)

    bound = 1.0 / math.sqrt(d_model)  # PyTorch Linear default init range
    params = {
        "wq": jax.random.uniform(kwq, (d_model, d_model), jnp.float32, -bound, bound),
        "bq": jax.random.uniform(kbq, (d_model,), jnp.float32, -bound, bound),
        "wo": jax.random.uniform(kwo, (d_model, d_model), jnp.float32, -bound, bound),
        "bo": jax.random.uniform(kbo, (d_model,), jnp.float32, -bound, bound),
    }

    # Causal mask: 1 = keep, 0 = masked (filled with -1e9).
    mask = jnp.tile(jnp.tril(jnp.ones((S, S), jnp.float32))[None, None],
                    (B, 1, 1, 1))  # (B, 1, S, S)

    ref = _reference_jax(q, k, v, mask, params, H)

    # 1) Pure-f32 MXU path: tight check (the only deliberate deviation is the
    #    approximate EUP reciprocal in the softmax denominator).
    out_f32 = multi_head_attention_block(q, k, v, mask, params,
                                         no_of_heads=H, batch_block=1,
                                         mxu_dtype=None)
    out_f32 = jax.block_until_ready(out_f32)
    assert out_f32.shape == (B, H, S, d_model), out_f32.shape
    np.testing.assert_allclose(np.asarray(out_f32), np.asarray(ref),
                               rtol=2e-3, atol=2e-3)

    # 2) Default bf16-MXU path (bf16 HBM traffic + MXU operands, f32
    #    accumulation / softmax): tolerance loosened to bf16 rounding level.
    out_bf16 = multi_head_attention_block(q, k, v, mask, params,
                                          no_of_heads=H, batch_block=1)
    out_bf16 = jax.block_until_ready(out_bf16)
    assert out_bf16.shape == (B, H, S, d_model), out_bf16.shape
    np.testing.assert_allclose(np.asarray(out_bf16), np.asarray(ref),
                               rtol=5e-2, atol=5e-2)

    print("KERNEL_OK")
</pallas_src>

<mosaic_0001>
module attributes {stable_mosaic.version = 11 : i64} {
  func.func @_mha_kernel(%arg0: i32, %arg1: memref<3x1x8x128xf32, #tpu.memory_space<vmem>>, %arg2: memref<1x1x8x8xi8, #tpu.memory_space<vmem>>, %arg3: memref<128x128xf32, #tpu.memory_space<vmem>>, %arg4: memref<1x128xf32, #tpu.memory_space<vmem>>, %arg5: memref<128x128xf32, #tpu.memory_space<vmem>>, %arg6: memref<1x128xf32, #tpu.memory_space<vmem>>, %arg7: memref<1x1x8x128xf32, #tpu.memory_space<vmem>>) attributes {dimension_semantics = [#tpu.dimension_semantics<parallel>], iteration_bounds = array<i64: 2>, scalar_prefetch = 0 : i64, scratch_operands = 0 : i64, tpu.core_type = #tpu.core_type<tc>, window_params = [{transform_indices = @transform_0, window_bounds = array<i64: 3, 1, 8, 128>}, {transform_indices = @transform_1, window_bounds = array<i64: 1, 1, 8, 8>}, {pipeline_mode = #tpu.pipeline_mode<synchronous>, transform_indices = @transform_2, window_bounds = array<i64: 128, 128>}, {pipeline_mode = #tpu.pipeline_mode<synchronous>, transform_indices = @transform_3, window_bounds = array<i64: 1, 128>}, {pipeline_mode = #tpu.pipeline_mode<synchronous>, transform_indices = @transform_4, window_bounds = array<i64: 128, 128>}, {pipeline_mode = #tpu.pipeline_mode<synchronous>, transform_indices = @transform_5, window_bounds = array<i64: 1, 128>}, {transform_indices = @transform_6, window_bounds = array<i64: 1, 1, 8, 128>}]} {
    %c0 = arith.constant 0 : index
    %c0_0 = arith.constant 0 : index
    %0 = vector.load %arg3[%c0, %c0_0] : memref<128x128xf32, #tpu.memory_space<vmem>>, vector<128x128xf32>
    %c0_1 = arith.constant 0 : index
    %c0_2 = arith.constant 0 : index
    %1 = vector.load %arg4[%c0_1, %c0_2] : memref<1x128xf32, #tpu.memory_space<vmem>>, vector<1x128xf32>
    %c0_3 = arith.constant 0 : index
    %c0_4 = arith.constant 0 : index
    %2 = vector.load %arg5[%c0_3, %c0_4] : memref<128x128xf32, #tpu.memory_space<vmem>>, vector<128x128xf32>
    %c0_5 = arith.constant 0 : index
    %c0_6 = arith.constant 0 : index
    %3 = vector.load %arg6[%c0_5, %c0_6] : memref<1x128xf32, #tpu.memory_space<vmem>>, vector<1x128xf32>
    %c0_7 = arith.constant 0 : index
    %c0_8 = arith.constant 0 : index
    %c0_9 = arith.constant 0 : index
    %c0_10 = arith.constant 0 : index
    %4 = vector.load %arg1[%c0_7, %c0_8, %c0_9, %c0_10] : memref<3x1x8x128xf32, #tpu.memory_space<vmem>>, vector<3x1x8x128xf32>
    %5 = vector.shape_cast %4 : vector<3x1x8x128xf32> to vector<24x128xf32>
    %cst = arith.constant dense<0.000000e+00> : vector<24x128xf32>
    %6 = tpu.matmul %5, %0, %cst {dimension_numbers = #tpu.dot_dimension_numbers<[1], [0], [0], [1], [0, 0, 1, 1], [], []>} : vector<24x128xf32>, vector<128x128xf32>, vector<24x128xf32> -> vector<24x128xf32>
    %7 = vector.broadcast %1 : vector<1x128xf32> to vector<24x128xf32>
    %8 = arith.addf %6, %7 : vector<24x128xf32>
    %9 = vector.extract_strided_slice %8 {offsets = [0, 0], sizes = [8, 128], strides = [1, 1]} : vector<24x128xf32> to vector<8x128xf32>
    %cst_11 = arith.constant 0.0883883461 : f32
    %10 = vector.broadcast %cst_11 : f32 to vector<8x128xf32>
    %11 = arith.mulf %9, %10 : vector<8x128xf32>
    %12 = vector.shape_cast %11 : vector<8x128xf32> to vector<1x8x128xf32>
    %13 = vector.extract_strided_slice %8 {offsets = [8, 0], sizes = [8, 128], strides = [1, 1]} : vector<24x128xf32> to vector<8x128xf32>
    %14 = vector.shape_cast %13 : vector<8x128xf32> to vector<1x8x128xf32>
    %15 = vector.extract_strided_slice %8 {offsets = [16, 0], sizes = [8, 128], strides = [1, 1]} : vector<24x128xf32> to vector<8x128xf32>
    %16 = vector.shape_cast %15 : vector<8x128xf32> to vector<1x8x128xf32>
    %c0_12 = arith.constant 0 : index
    %c0_13 = arith.constant 0 : index
    %c0_14 = arith.constant 0 : index
    %c0_15 = arith.constant 0 : index
    %17 = vector.load %arg2[%c0_12, %c0_13, %c0_14, %c0_15] : memref<1x1x8x8xi8, #tpu.memory_space<vmem>>, vector<1x1x8x8xi8>
    %18 = vector.shape_cast %17 : vector<1x1x8x8xi8> to vector<1x8x8xi8>
    %c0_i8 = arith.constant 0 : i8
    %19 = vector.broadcast %c0_i8 : i8 to vector<1x8x8xi8>
    %20 = arith.cmpi ne, %18, %19 : vector<1x8x8xi8>
    "tpu.trace_start"() <{level = 10 : i32, message = "bqd,bkd->bqk"}> : () -> ()
    %cst_16 = arith.constant dense<0.000000e+00> : vector<1x8x8xf32>
    %21 = tpu.matmul %12, %14, %cst_16 {dimension_numbers = #tpu.dot_dimension_numbers<[2], [2], [1], [1], [0, 0, 0, 1, 1, 1], [0], [0]>} : vector<1x8x128xf32>, vector<1x8x128xf32>, vector<1x8x8xf32> -> vector<1x8x8xf32>
    %cst_17 = arith.constant -1.000000e+09 : f32
    "tpu.trace_stop"() : () -> ()
    %22 = vector.broadcast %cst_17 : f32 to vector<1x8x8xf32>
    %23 = arith.select %20, %22, %21 : vector<1x8x8xi1>, vector<1x8x8xf32>
    %cst_18 = arith.constant dense<0xFF800000> : vector<1x8xf32>
    %24 = vector.multi_reduction <maximumf>, %23, %cst_18 [2] : vector<1x8x8xf32> to vector<1x8xf32>
    %25 = vector.shape_cast %24 : vector<1x8xf32> to vector<1x8x1xf32>
    %26 = vector.broadcast %25 : vector<1x8x1xf32> to vector<1x8x8xf32>
    %27 = arith.subf %23, %26 : vector<1x8x8xf32>
    %28 = math.exp %27 : vector<1x8x8xf32>
    %cst_19 = arith.constant dense<0.000000e+00> : vector<1x8xf32>
    %29 = vector.multi_reduction <add>, %28, %cst_19 [2] : vector<1x8x8xf32> to vector<1x8xf32>
    %30 = vector.shape_cast %29 : vector<1x8xf32> to vector<1x8x1xf32>
    "tpu.trace_start"() <{level = 10 : i32, message = "bqk,bkd->bqd"}> : () -> ()
    %cst_20 = arith.constant dense<0.000000e+00> : vector<1x8x128xf32>
    %31 = tpu.matmul %28, %16, %cst_20 {dimension_numbers = #tpu.dot_dimension_numbers<[2], [1], [1], [2], [0, 0, 0, 1, 1, 2], [0], [0]>} : vector<1x8x8xf32>, vector<1x8x128xf32>, vector<1x8x128xf32> -> vector<1x8x128xf32>
    "tpu.trace_stop"() : () -> ()
    %32 = tpu.reciprocal %30 {approx = true} : vector<1x8x1xf32> -> vector<1x8x1xf32>
    %33 = vector.broadcast %32 : vector<1x8x1xf32> to vector<1x8x128xf32>
    %34 = arith.mulf %31, %33 : vector<1x8x128xf32>
    %35 = vector.shape_cast %34 : vector<1x8x128xf32> to vector<8x128xf32>
    %cst_21 = arith.constant dense<0.000000e+00> : vector<8x128xf32>
    %36 = tpu.matmul %35, %2, %cst_21 {dimension_numbers = #tpu.dot_dimension_numbers<[1], [0], [0], [1], [0, 0, 1, 1], [], []>} : vector<8x128xf32>, vector<128x128xf32>, vector<8x128xf32> -> vector<8x128xf32>
    %37 = vector.broadcast %3 : vector<1x128xf32> to vector<8x128xf32>
    %38 = arith.addf %36, %37 : vector<8x128xf32>
    %39 = vector.shape_cast %38 : vector<8x128xf32> to vector<1x1x8x128xf32>
    %c0_22 = arith.constant 0 : index
    %c0_23 = arith.constant 0 : index
    %c0_24 = arith.constant 0 : index
    %c0_25 = arith.constant 0 : index
    %40 = vector.load %arg7[%c0_22, %c0_23, %c0_24, %c0_25] : memref<1x1x8x128xf32, #tpu.memory_space<vmem>>, vector<1x1x8x128xf32>
    tpu.vector_store %arg7[%c0_22, %c0_23, %c0_24, %c0_25], %39 {strides = array<i32>} : memref<1x1x8x128xf32, #tpu.memory_space<vmem>>, vector<1x1x8x128xf32>,
    return
  }
  func.func @transform_0(%arg0: i32) -> (i32, i32, i32, i32) {
    %c0_i32 = arith.constant 0 : i32
    %c0_i32_0 = arith.constant 0 : i32
    %c0_i32_1 = arith.constant 0 : i32
    %c0_i32_2 = arith.constant 0 : i32
    return %c0_i32, %arg0, %c0_i32_0, %c0_i32_1 : i32, i32, i32, i32
  }
  func.func @transform_1(%arg0: i32) -> (i32, i32, i32, i32) {
    %c0_i32 = arith.constant 0 : i32
    %c0_i32_0 = arith.constant 0 : i32
    %c0_i32_1 = arith.constant 0 : i32
    %c0_i32_2 = arith.constant 0 : i32
    return %arg0, %c0_i32, %c0_i32_0, %c0_i32_1 : i32, i32, i32, i32
  }
  func.func @transform_2(%arg0: i32) -> (i32, i32) {
    %c0_i32 = arith.constant 0 : i32
    %c0_i32_0 = arith.constant 0 : i32
    %c0_i32_1 = arith.constant 0 : i32
    return %c0_i32, %c0_i32_0 : i32, i32
  }
  func.func @transform_3(%arg0: i32) -> (i32, i32) {
    %c0_i32 = arith.constant 0 : i32
    %c0_i32_0 = arith.constant 0 : i32
    %c0_i32_1 = arith.constant 0 : i32
    return %c0_i32, %c0_i32_0 : i32, i32
  }
  func.func @transform_4(%arg0: i32) -> (i32, i32) {
    %c0_i32 = arith.constant 0 : i32
    %c0_i32_0 = arith.constant 0 : i32
    %c0_i32_1 = arith.constant 0 : i32
    return %c0_i32, %c0_i32_0 : i32, i32
  }
  func.func @transform_5(%arg0: i32) -> (i32, i32) {
    %c0_i32 = arith.constant 0 : i32
    %c0_i32_0 = arith.constant 0 : i32
    %c0_i32_1 = arith.constant 0 : i32
    return %c0_i32, %c0_i32_0 : i32, i32
  }
  func.func @transform_6(%arg0: i32) -> (i32, i32, i32, i32) {
    %c0_i32 = arith.constant 0 : i32
    %c0_i32_0 = arith.constant 0 : i32
    %c0_i32_1 = arith.constant 0 : i32
    %c0_i32_2 = arith.constant 0 : i32
    return %arg0, %c0_i32, %c0_i32_0, %c0_i32_1 : i32, i32, i32, i32
  }
}

</mosaic_0001>

<bundles_post_ra>
// kernel: tpu_custom_call.1
= control target key start
LH: loop header
LB: loop body
LE: loop exit
PB: predicated region body
PF: predicated region fallthrough
CT: control target
= control target key end

     0   :  { %s1169_s0 = inlined_call_operand.hbm [shape: f32[3,2,8,128], index: 0, kind: input, shape index: {}]   ;;  %s1170_s1 = inlined_call_operand.hbm [shape: s8[2,1,8,8], index: 1, kind: input, shape index: {}]   ;;  %s1171_s2 = inlined_call_operand.hbm [shape: f32[128,128], index: 2, kind: input, shape index: {}]   ;;  %s1172_s3 = inlined_call_operand.vmem [shape: f32[1,128], index: 3, kind: input, shape index: {}]   ;;  %s1173_s4 = inlined_call_operand.hbm [shape: f32[128,128], index: 4, kind: input, shape index: {}]   ;;  %s1174_s5 = inlined_call_operand.vmem [shape: f32[1,128], index: 5, kind: input, shape index: {}]   ;;  %s1175_s6 = inlined_call_operand.hbm [shape: f32[2,1,8,128], index: 6, kind: output, shape index: {}]  }
   0x1   :  { %1182 = sst [smem:[#allocation20_spill]] %s1169_s0 }
   0x2   :  { %1183 = sst [smem:[#allocation21_spill]] %s1171_s2 }
   0x3   :  { %1184 = sst [smem:[#allocation22_spill]] %s1173_s4 }
   0x4   :  { %11 = vsyncpa [#allocation3], 0 }
   0x5   :  { %13 = vsyncpa [#allocation3 + $0x1], 0 }
   0x6   :  { %14 = vsyncpa [#allocation6], 0 }
   0x7   :  { %16 = vsyncpa [#allocation6 + $0x1], 0 }
   0x8   :  { %17 = vsyncpa [#allocation9], 0 }
   0x9   :  { %18 = vsyncpa [#allocation4], 0 }
   0xa   :  { %20 = vsyncpa [#allocation4 + $0x1], 0  ;;  %s968_s21 = smov 0   ;;  %s970_s22 = smov 0  }
   0xb   :  { %s972_s23 = smov 0   ;;  %s974_s24 = smov 0  }
   0xc LB: > { %1185 = sst [smem:[#allocation16_spill]] %s921_s23  ;;  %s989_s25 = sadd.s32 4294967295, %s925_s24   ;;  %s925_s24 = sphi %s974_s24, %s1201_s24   ;;  %s921_s23 = sphi %s972_s23, %s1203_s23   ;;  %s917_s22 = sphi %s970_s22, %s1205_s22   ;;  %s913_s21 = sphi %s968_s21, %s1204_s21  }
   0xd   : > { %s625_s26 = sadd.s32 4294967294, %s925_s24   ;;  %p46_p0 = scmp.ne.s32.totalorder %s917_s22, %s913_s21 }
   0xe   : > { %p47_p1 = scmp.eq.s32.totalorder %s989_s25, 0  ;;  %p180_p2 = scmp.eq.s32.totalorder %s989_s25, 1 }
   0xf   : > { %p186_p3 = scmp.eq.s32.totalorder %s625_s26, 1  ;;  %p626_p5 = scmp.ge.s32.totalorder %s925_s24, 1 }
  0x10   : > { %p998_p4 = por %p47_p1, %p46_p0  ;;  %p193_p7 = scmp.lt.s32.totalorder %s925_s24, 3 }
  0x11   : > { %p1003_p6 = por %p186_p3, %p46_p0  ;;  %s1189_s2 = sld [smem:[#allocation21_spill]] }
  0x12   : > { %p1011_p8 = pnand %p626_p5, %p193_p7  ;;  %s927_s9 = smov [#allocation7]  }
  0x13   : > { %s1187_s28 = scalar_select %p1003_p6, 1, 0 }
  0x14   : > { %p659_p9 = pneg %p1011_p8  ;;  %s206_s10 = sshll.u32 %s927_s9, 4  ;;  %s207_s10 = int_to_ptr.vmem [resolvable:$true] %s206_s10 }
  0x15   : > { %1188 = sst [smem:[#allocation17_spill]] %s1187_s28  ;;  %s1176_s14 = smov 128  }
  0x16   : > { %p660_p10 = pnand %p659_p9, %p47_p1  ;;  %s1191_s4 = sld [smem:[#allocation22_spill]] }
  0x17   : > { %s204_s7 = sshll.u32 %s1189_s2, 4  ;;  %s1177_s15 = smov 8   ;;  %s205_s7 = int_to_ptr.hbm [resolvable:$true] %s204_s7 }
  0x18   : > { %662 = dma.hbm_to_vmem [thread:$0]  (!%p660_p10), %s205_s7, 2048, %s207_s10, [#allocation6], %s1176_s14, %s1176_s14, %s1177_s15  }
  0x19   : > { %s930_s16 = smov [#allocation8]   ;;  %s1030_s18 = sadd.s32 1, %s925_s24  }
  0x1a   : > { %s223_s17 = sshll.u32 %s930_s16, 4  ;;  %1192 = sst [smem:[#allocation18_spill]] %s1030_s18  ;;  %s224_s17 = int_to_ptr.vmem [resolvable:$true] %s223_s17 }
  0x1b   : > { %s33_s19 = sadd.s32 1, %s921_s23  ;;  %s30_s20 = ssub.s32 %s925_s24, %s1030_s18 }
  0x1c   : > { %s221_s13 = sshll.u32 %s1191_s4, 4  ;;  %p40_p12 = scmp.ne.s32.totalorder %s921_s23, %s917_s22  ;;  %s222_s13 = int_to_ptr.hbm [resolvable:$true] %s221_s13 }
  0x1d   : > { %665 = dma.hbm_to_vmem [thread:$0]  (!%p660_p10), %s222_s13, 2048, %s224_s17, [#allocation9], %s1176_s14, %s1176_s14, %s1177_s15  }
  0x1e   : > { %p31_p13 = scmp.eq.s32.totalorder %s30_s20, 0  ;;  %p41_p0 = scmp.eq.s32.totalorder %s925_s24, 0 }
  0x1f   : > { %p1040_p3 = por %p180_p2, %p40_p12  ;;  %p679_p5 = scmp.lt.s32.totalorder %s925_s24, 2 }
  0x20   : > { %s1046_s29 = scalar_select %p31_p13, %s921_s23, %s33_s19  }
  0x21   : > { %p42_p7 = por %p41_p0, %p40_p12  ;;  %s1049_s30 = sand.u32 1, %s921_s23  }
  0x22   : > { %1194 = sst [smem:[#allocation19_spill]] %s1046_s29  ;;  %s643_s7 = smul.u32 24, %s1049_s30 }
  0x23   : > { %s630_s9 = sshll.u32 %s925_s24, 3  ;;  %p1053_p9 = pnand %p679_p5, %p42_p7 }
  0x24   : > { %s1196_s0 = sld [smem:[#allocation20_spill]]  ;;  %s244_s17 = scalar_lea.vmem [#allocation2], %s643_s7 }
  0x25   : > { %s251_s19 = sshll.u32 %s244_s17, 4  ;;  %s241_s20 = scalar_lea.sflag [#allocation3], %s1049_s30  ;;  %s252_s19 = int_to_ptr.vmem [resolvable:$true] %s251_s19 }
  0x26   : > { %p791_p10 = pneg %p1053_p9 }
  0x2a   : > { %s248_s13 = scalar_lea.hbm %s1196_s0, %s630_s9  ;;  %s794_s9 = scalar_lea.hbm %s1196_s0, 48 }
  0x2b   : > { %s249_s16 = sshll.u32 %s248_s13, 4  ;;  %s250_s16 = int_to_ptr.hbm [resolvable:$true] %s249_s16 }
  0x2c   : > { %s787_s14 = sshra.s32 %s250_s16, 4  ;;  %s788_s14 = int_to_ptr.hbm [resolvable:$true] %s787_s14 }
  0x2d   : > { %s789_s15 = scalar_lea.hbm %s788_s14, 24  ;;  %p795_p0 = scmp.lt.s32.totalorder %s788_s14, %s1196_s0 }
  0x2e   : > { %p790_p2 = scmp.ne.s32.totalorder %s788_s14, %s789_s15  ;;  %p796_p5 = scmp.lt.s32.totalorder %s794_s9, %s789_s15 }
  0x30   : > { %p792_p12 = pnand %p791_p10, %p790_p2  ;;  %p797_p7 = por %p796_p5, %p795_p0 }
  0x32   : > { %p793_p13 = pneg %p792_p12 }
  0x34   : > { %p798_p11 = pnand %p797_p7, %p793_p13 }
  0x36   : > { %801 = shalt.err (!%p798_p11)
}
  0x37   : > { %s931_s17 = smov 256   ;;  %s1197_s2 = smov 8  }
  0x38   : > { %s1198_s4 = smov 128   ;;  %s261_s11 = sand.u32 1, %s925_s24  }
  0x39   : > { %669 = dma.hbm_to_vmem [thread:$0]  (!%p1053_p9), %s250_s16, 384, %s252_s19, %s241_s20, %s931_s17, %s1198_s4, %s1197_s2  }
  0x3a   : > { %s631_s12 = sshll.u32 %s1049_s30, 1  ;;  %s632_s29 = sshll.u32 %s925_s24, 1 }
  0x3b   : > { %s265_s23 = scalar_lea.vmem [#allocation5], %s631_s12  ;;  %s269_s9 = scalar_lea.hbm %s1170_s1, %s632_s29 }
  0x3c   : > { %s273_s13 = sshll.u32 %s265_s23, 4  ;;  %s271_s7 = sshll.u32 %s269_s9, 4  ;;  %s274_s13 = int_to_ptr.vmem [resolvable:$true] %s273_s13  ;;  %s272_s7 = int_to_ptr.hbm [resolvable:$true] %s271_s7 }
  0x3d   : > { %s262_s0 = scalar_lea.sflag [#allocation6], %s261_s11  ;;  %s817_s18 = sshra.s32 %s272_s7, 4  ;;  %s818_s18 = int_to_ptr.hbm [resolvable:$true] %s817_s18 }
  0x3e   : > { %s819_s28 = scalar_lea.hbm %s818_s18, 2  ;;  %s824_s23 = scalar_lea.hbm %s1170_s1, 4 }
  0x3f   : > { %p820_p11 = scmp.ne.s32.totalorder %s818_s18, %s819_s28  ;;  %p825_p13 = scmp.lt.s32.totalorder %s818_s18, %s1170_s1 }
  0x40   : > { %p826_p0 = scmp.lt.s32.totalorder %s824_s23, %s819_s28 }
  0x41   : > { %p822_p2 = pnand %p820_p11, %p791_p10 }
  0x42   : > { %p827_p5 = por %p826_p0, %p825_p13 }
  0x43   : > { %p823_p12 = pneg %p822_p2 }
  0x45   : > { %p828_p7 = pnand %p827_p5, %p823_p12 }
  0x47   : > { %831 = shalt.err (!%p828_p7)
}
  0x48   : > { %672 = dma.hbm_to_vmem [thread:$0]  (!%p1053_p9), %s272_s7, 32, %s274_s13, %s262_s0  }
  0x49   : > { %282 = sbr.rel (%p1011_p8) target bundleno = 783 (0x30f), region = 44  ;;  %s1096_s29 = sand.u32 (!%p1011_p8), 1, %s917_s22  }
  0x4a   : > { %s644_s19 = smul.u32 (!%p1011_p8), 24, %s1096_s29  ;;  %s285_s20 = scalar_lea.sflag (!%p1011_p8), [#allocation3], %s1096_s29 }
  0x4c   : > { %s1100_s17 = scalar_lea.vmem (!%p1011_p8), [#allocation2], %s644_s19 }
  0x4e   : > { %892 = dma.done.wait (%p998_p4), %s285_s20, 384  }
  0x4f   : > { %894 = vsyncadd (%p998_p4), %s285_s20, 4294966912  ;;  %s294_s0 = sand.u32 1, %s989_s25   ;;  %s634_s28 = sshll.u32 %s1096_s29, 1 }
  0x50   : > { %s295_s8 = scalar_lea.sflag [#allocation6], %s294_s0  ;;  %s1108_s18 = scalar_lea.vmem [#allocation5], %s634_s28 }
  0x51   : > { %896 = dma.done.wait (%p998_p4), %s295_s8, 32  }
  0x52   : > { %898 = vsyncadd (%p998_p4), %s295_s8, 4294967264 }
  0x53   : > { %900 = dma.done.wait (%p47_p1), [#allocation6], 2048  }
  0x54   : > { %902 = vsyncadd (%p47_p1), [#allocation6], 4294965248 }
  0x55   : > { %904 = dma.done.wait (%p47_p1), [#allocation9], 2048  }
  0x56   : > { %906 = vsyncadd (%p47_p1), [#allocation9], 4294965248  ;;  %v360_v0 = vld [vmem:[#allocation7 + $0x78] sm:$0xff]  ;;  %v359_v1 = vld [vmem:[#allocation7 + $0x70] sm:$0xff]  ;;  %v932_v26 = vmov 0   ;;  %vm438_vm2 = vcmask 64512  }
  0x57   : > { %385 = vmatpush.msra.mxu0 %v360_v0  ;;  %v358_v2 = vld [vmem:[#allocation7 + $0x68] sm:$0xff]  ;;  %v357_v3 = vld [vmem:[#allocation7 + $0x60] sm:$0xff]  ;;  %v356_v4 = vld [vmem:[#allocation7 + $0x58] sm:$0xff]  ;;  %s637_s11 = sshll.u32 %s1096_s29, 3  ;;  %s640_s12 = sshll.u32 %s989_s25, 3 }
  0x58   : > { %v355_v5 = vld [vmem:[#allocation7 + $0x50] sm:$0xff]  ;;  %v354_v6 = vld [vmem:[#allocation7 + $0x48] sm:$0xff]  ;;  %v353_v7 = vld [vmem:[#allocation7 + $0x40] sm:$0xff]  ;;  %s508_s15 = scalar_lea.hbm %s1175_s6, %s640_s12  ;;  %s342_s2 = scalar_lea.vmem [#allocation10], %s637_s11 }
  0x59   : > { %386 = vmatpush.msra.mxu0 %v359_v1  ;;  %v352_v8 = vld [vmem:[#allocation7 + $0x38] sm:$0xff]  ;;  %v351_v9 = vld [vmem:[#allocation7 + $0x30] sm:$0xff]  ;;  %v350_v10 = vld [vmem:[#allocation7 + $0x28] sm:$0xff]  ;;  %s510_s4 = sshll.u32 %s342_s2, 4  ;;  %s512_s23 = sshll.u32 %s508_s15, 4  ;;  %s511_s4 = int_to_ptr.vmem [resolvable:$true] %s510_s4  ;;  %s513_s23 = int_to_ptr.hbm [resolvable:$true] %s512_s23 }
  0x5a   : > { %v349_v11 = vld [vmem:[#allocation7 + $0x20] sm:$0xff]  ;;  %v348_v12 = vld [vmem:[#allocation7 + $0x18] sm:$0xff]  ;;  %v347_v13 = vld [vmem:[#allocation7 + $0x10] sm:$0xff]  ;;  %s498_s30 = scalar_lea.sflag [#allocation4], %s1096_s29  ;;  %s861_s16 = sshra.s32 %s513_s23, 4  ;;  %s862_s16 = int_to_ptr.hbm [resolvable:$true] %s861_s16 }
  0x5b   : > { %387 = vmatpush.msra.mxu0 %v358_v2  ;;  %v346_v14 = vld [vmem:[#allocation7 + $0x8] sm:$0xff]  ;;  %v345_v15 = vld [vmem:[#allocation7] sm:$0xff]  ;;  %v412_v25 = vld [vmem:[%s1108_s18] sm:$0x3]  ;;  %s863_s25 = scalar_lea.hbm %s862_s16, 8  ;;  %p868_p9 = scmp.lt.s32.totalorder %s862_s16, %s1175_s6 }
  0x5c   : > { %v379_v16 = vld [vmem:[%s1100_s17] sm:$0xff]  ;;  %v380_v17 = vld [vmem:[%s1100_s17 + $0x8] sm:$0xff]  ;;  %v381_v24 = vld [vmem:[%s1100_s17 + $0x10] sm:$0xff]  ;;  %vm413_vm0 = vnez %v412_v25  ;;  %p864_p1 = scmp.ne.s32.totalorder %s862_s16, %s863_s25  ;;  %s867_s17 = scalar_lea.hbm %s1175_s6, 16 }
  0x5d   : > { %388 = vmatpush.msra.mxu0 %v357_v3  ;;  %v721_v19 = vld [vmem:[%s1172_s3] ss:$0 sm:$0xff]  ;;  %v434_v27 = vsel %vm413_vm0, 16843009, %v932_v26  ;;  %v377_v34 = vld [vmem:[#allocation8 + $0x78] sm:$0xff]  ;;  %v376_v35 = vld [vmem:[#allocation8 + $0x70] sm:$0xff]  ;;  %p869_p10 = scmp.lt.s32.totalorder %s867_s17, %s863_s25 }
  0x5e   : > { %v435_v28 = vunpack.c.0.s8 %v434_v27  ;;  %476 = vmatpush.msra.mxu3 %v377_v34  ;;  %v375_v36 = vld [vmem:[#allocation8 + $0x68] sm:$0xff]  ;;  %v374_v37 = vld [vmem:[#allocation8 + $0x60] sm:$0xff]  ;;  %v373_v38 = vld [vmem:[#allocation8 + $0x58] sm:$0xff]  ;;  %p865_p4 = pnand %p864_p1, %p1040_p3 }
  0x5f   : > { %389 = vmatpush.msra.mxu0 %v356_v4  ;;  %v372_v39 = vld [vmem:[#allocation8 + $0x50] sm:$0xff]  ;;  %v371_v40 = vld [vmem:[#allocation8 + $0x48] sm:$0xff]  ;;  %v370_v46 = vld [vmem:[#allocation8 + $0x40] sm:$0xff]  ;;  %p870_p11 = por %p869_p10, %p868_p9 }
  0x60   : > { %vm436_vm1 = vcmp.ne.s32.totalorder %v435_v28, 0  ;;  %477 = vmatpush.msra.mxu3 %v376_v35  ;;  %v369_v47 = vld [vmem:[#allocation8 + $0x38] sm:$0xff]  ;;  %v368_v48 = vld [vmem:[#allocation8 + $0x30] sm:$0xff]  ;;  %v367_v49 = vld [vmem:[#allocation8 + $0x28] sm:$0xff]  ;;  %p866_p8 = pneg %p865_p4 }
  0x61   : > { %390 = vmatpush.msra.mxu0 %v355_v5  ;;  %v366_v50 = vld [vmem:[#allocation8 + $0x20] sm:$0xff]  ;;  %v365_v51 = vld [vmem:[#allocation8 + $0x18] sm:$0xff]  ;;  %v364_v52 = vld [vmem:[#allocation8 + $0x10] sm:$0xff] }
  0x62   : > { %478 = vmatpush.msra.mxu3 %v375_v36  ;;  %v363_v53 = vld [vmem:[#allocation8 + $0x8] sm:$0xff]  ;;  %v362_v54 = vld [vmem:[#allocation8] sm:$0xff]  ;;  %p871_p2 = pnand %p870_p11, %p866_p8 }
  0x63   : > { %391 = vmatpush.msra.mxu0 %v354_v6  ;;  %v722_v59 = vld [vmem:[%s1174_s5] ss:$0 sm:$0xff] }
  0x64   : > { %479 = vmatpush.msra.mxu3 %v374_v37 }
  0x65   : > { %392 = vmatpush.msra.mxu0 %v353_v7 }
  0x66   : > { %480 = vmatpush.msra.mxu3 %v373_v38 }
  0x67   : > { %393 = vmatpush.msra.mxu0 %v352_v8 }
  0x68   : > { %481 = vmatpush.msra.mxu3 %v372_v39 }
  0x69   : > { %394 = vmatpush.msra.mxu0 %v351_v9 }
  0x6a   : > { %482 = vmatpush.msra.mxu3 %v371_v40 }
  0x6b   : > { %395 = vmatpush.msra.mxu0 %v350_v10 }
  0x6c   : > { %483 = vmatpush.msra.mxu3 %v370_v46 }
  0x6d   : > { %396 = vmatpush.msra.mxu0 %v349_v11 }
  0x6e   : > { %484 = vmatpush.msra.mxu3 %v369_v47 }
  0x6f   : > { %397 = vmatpush.msra.mxu0 %v348_v12 }
  0x70   : > { %485 = vmatpush.msra.mxu3 %v368_v48 }
  0x71   : > { %398 = vmatpush.msra.mxu0 %v347_v13 }
  0x72   : > { %486 = vmatpush.msra.mxu3 %v367_v49 }
  0x73   : > { %399 = vmatpush.msra.mxu0 %v346_v14 }
  0x74   : > { %487 = vmatpush.msra.mxu3 %v366_v50 }
  0x75   : > { %400 = vmatpush.msra.mxu0 %v345_v15 }
  0x76   : > { %401 = vmatmul.f32.vlgmr.msra.gmra.mxu0 %v379_v16  ;;  %488 = vmatpush.msra.mxu3 %v365_v51 }
  0x78   : > { %489 = vmatpush.msra.mxu3 %v364_v52 }
  0x7a   : > { %490 = vmatpush.msra.mxu3 %v363_v53 }
  0x7c   : > { %491 = vmatpush.msra.mxu3 %v362_v54 }
  0x7e   : > { %404 = vmatmul.f32.gmra.mxu0 %v380_v17 }
  0x86   : > { %407 = vmatmul.f32.gmra.mxu0 %v381_v24 }
  0xf3   : > { %v402_v18 = vpop.f32.mrf.mxu0 }
  0xf4   : > { %v403_v20 = vadd.f32 %v721_v19, %v402_v18 }
  0xf6   : > { %v411_v23 = vmul.f32 0.088388346, %v403_v20 }
  0xfb   : > { %v405_v21 = vpop.f32.mrf.mxu0 }
  0xfc   : > { %v406_v22 = vadd.f32 %v721_v19, %v405_v21 }
  0xfe   : > { %429 = vmatpush.xpose.msra.mxu1 %v406_v22 }
 0x101   : > { %430 = vmatmul.f32.vlgmr.msra.gmra.mxu1 %v411_v23 }
 0x103   : > { %v408_v32 = vpop.f32.mrf.mxu0 }
 0x104   : > { %v409_v33 = vadd.f32 %v721_v19, %v408_v32 }
 0x106   : > { %466 = vmatpush.msra.mxu2 %v409_v33 }
 0x17e   : > { %v431_v29 = vpop.f32.mrf.mxu1 }
 0x17f   : > { %v437_v30 = vsel %vm436_vm1, -1e+09, %v431_v29 }
 0x180   : > { %v439_v31 = vsel %vm438_vm2, %v437_v30, -inf }
 0x181   : > { %440 = vmax.xlane.f32.xlu0 %v439_v31 }
 0x1f4   : > { %v441_v41 = vpop.xlane.xlu0 %440 }
 0x1f5   : > { %v442_v42 = vsub.f32 %v437_v30, %v441_v41 }
 0x1f7   : > { %v443_v43 = vmul.f32 1.442695, %v442_v42 }
 0x1f9   : > { %723 = vpow2.f32 %v443_v43 }
 0x1ff   : > { %v724_v44 = vpop.eup %723 }
 0x200   : > { %638 = vmatmul.msk.f32.vlgmr.msra.gmra.mxu2 %vm438_vm2, %v724_v44  ;;  %v445_v45 = vsel %vm438_vm2, %v724_v44, 0.0 }
 0x201   : > { %446 = vadd.xlane.f32.xlu0 %v445_v45 }
 0x274   : > { %v447_v55 = vpop.xlane.xlu0 %446 }
 0x275   : > { %725 = vrcp.f32 %v447_v55 }
 0x27b   : > { %v726_v56 = vpop.eup %725 }
 0x283   : > { %v468_v57 = vpop.f32.mrf.mxu2 }
 0x284   : > { %v472_v58 = vmul.f32 %v726_v56, %v468_v57 }
 0x286   : > { %492 = vmatmul.f32.vlgmr.msra.gmra.mxu3 %v472_v58 }
 0x309   : > { %v493_v60 = vpop.f32.mrf.mxu3 }
 0x30a   : > { %v494_v61 = vadd.f32 %v722_v59, %v493_v60 }
 0x30c   : > { %496 = vst [vmem:[%s342_s2] sm:$0xff] %v494_v61 }
 0x30d   : > { %874 = shalt.err (!%p871_p2)
}
 0x30e   : > { %657 = dma.vmem_to_hbm [thread:$0]  (%p1040_p3), %s511_s4, 128, %s513_s23, %s498_s30  }
 0x30f PF: > { %s524_s8 = sand.u32 1, %s913_s21   ;;  %p1200_p12 = scmp.ge.s32.totalorder %s925_s24, 2 }
 0x310   : > { %s525_s18 = scalar_lea.sflag [#allocation4], %s524_s8 }
 0x311   : > { %p674_p13 = pnand %p1200_p12, %p1003_p6 }
 0x313   : > { %p675_p0 = pneg %p674_p13 }
 0x315   : > { %908 = dma.done.wait (%p675_p0), %s525_s18, 128  }
 0x316   : > { %910 = vsyncadd (%p675_p0), %s525_s18, 4294967168  ;;  %s1201_s24 = sld [smem:[#allocation18_spill]]  ;;  %s1204_s21 = smov %s917_s22 }
 0x317   : > { %s1202_s27 = sld [smem:[#allocation16_spill]] }
 0x318   : > { %s1203_s23 = sld [smem:[#allocation19_spill]] }
 0x31c   : > { %p23_p5 = scmp.ge.s32.totalorder %s1201_s24, 4  }
 0x31d   : > { %s1205_s22 = smov %s1202_s27 }
 0x31e   :  { %25 = sbr.rel (!%p23_p5) target bundleno = 12 (0xc), region = 110 }
 0x323   :  { %531 = vsyncpa [#allocation3], 1 }
 0x324   :  { %533 = vsyncpa [#allocation3 + $0x1], 1 }
 0x325   :  { %534 = vsyncpa [#allocation6], 1 }
 0x326   :  { %536 = vsyncpa [#allocation6 + $0x1], 1 }
 0x327   :  { %537 = vsyncpa [#allocation9], 1 }
 0x328   :  { %538 = vsyncpa [#allocation4], 1 }
 0x329   :  { %540 = vsyncpa [#allocation4 + $0x1], 1 }

</bundles_post_ra>
